<compile_context>
chip_gen: v7x
topology: tpu7x:2x2x1
jax: 0.10.0
libtpu: 0.0.40
codegen_flags: <defaults>
</compile_context>

<pallas_src>
import functools
import math

import jax
import jax.numpy as jnp
from jax.experimental import pallas as pl
from jax.experimental.pallas import tpu as pltpu


def _iqn_feature_kernel(x_ref, tau_ref, freq_ref, wf_ref, bf_ref, we_ref,
                        be_ref, out_ref, *, H, reduction, mxu_dtype):
    x = x_ref[...]
    wf = wf_ref[...]
    we = we_ref[...]
    if mxu_dtype is not None:  # optional bf16 MXU path (f32 accumulate)
        x = x.astype(mxu_dtype)
        wf = wf.astype(mxu_dtype)
        we = we.astype(mxu_dtype)

    # ---- feature branch: Linear(D_in, H) + ReLU -------------------------
    feat = jnp.dot(x, wf, preferred_element_type=jnp.float32)
    feat = jnp.maximum(feat + bf_ref[...], 0.0)

    # ---- embedding branch: cos(pi * i * tau), Linear + ReLU -------------
    # freq_ref holds pi * i (i = 1..n_cos_p) precomputed in the wrapper; the
    # cos runs on the otherwise-idle EUP slot.  Padded indices >= n_cos hit
    # zero weight rows, so they do not change the result.
    cos_feat = jnp.cos(tau_ref[...] * freq_ref[...])      # [tb,1]*[1,ncp]
    if mxu_dtype is not None:
        cos_feat = cos_feat.astype(mxu_dtype)
    emb = jnp.dot(cos_feat, we, preferred_element_type=jnp.float32)
    emb = jnp.maximum(emb + be_ref[...], 0.0)

    # ---- combine (reduction is a static Python choice) ------------------
    if reduction == 'product':
        out_ref[...] = feat * emb
    elif reduction == 'residual':
        out_ref[...] = feat * (1.0 + emb)
    else:  # 'concat': two direct lane-aligned slice stores (no concat copy)
        out_ref[:, :H] = feat
        out_ref[:, H:] = emb


def _pick_tb(B):
    """Largest 8-aligned batch tile; keep >= 2 grid steps on 2-TC chips."""
    try:
        kind = jax.devices()[0].device_kind.lower()
    except Exception:
        kind = ''
    two_cores = ('v7' in kind) or ('7x' in kind)
    min_steps = 2 if two_cores else 1
    for cand in (1024, 512, 256, 128):        # biggest tile that divides B
        if B % cand == 0 and B // cand >= min_steps:
            return cand
    if min_steps == 2 and B % 16 == 0:
        return B // 2                          # two 8-aligned steps, both TCs
    return B                                   # single step: whole batch


def iqn_feature(x, tau, w_f, b_f, w_e, b_e, *, reduction='product',
                tb=None, mxu_dtype=None):
    if reduction not in ('product', 'concat', 'residual'):
        raise ValueError(f'{reduction!r} is not a valid value for reduction')
    B, D_in = x.shape
    n_cos, H = w_e.shape
    assert w_f.shape == (D_in, H)

    # Zero-pad the cos-basis dimension up to a lane-full multiple of 128
    # (weight rows only -> exactly the same math, full-lane K on the MXU).
    n_cos_p = ((n_cos + 127) // 128) * 128
    if n_cos_p != n_cos:
        w_e = jnp.pad(w_e, ((0, n_cos_p - n_cos), (0, 0)))
    # TODO(synk): D_in (=32 here) is left lane-partial on purpose; padding it
    # would add real HBM traffic for the activations.

    # Precomputed cos frequencies pi * i, resident in VMEM across grid steps.
    freq = (math.pi * jnp.arange(1, n_cos_p + 1, dtype=jnp.float32)
            ).reshape(1, n_cos_p)

    if tb is None:
        tb = _pick_tb(B)
    assert B % tb == 0
    out_w = 2 * H if reduction == 'concat' else H

    kernel = functools.partial(_iqn_feature_kernel, H=H,
                               reduction=reduction, mxu_dtype=mxu_dtype)

    flops = 2 * B * (D_in + n_cos_p) * H + 4 * B * out_w
    bytes_accessed = 4 * (x.size + tau.size + freq.size + w_f.size
                          + b_f.size + w_e.size + b_e.size + B * out_w)
    cost = pl.CostEstimate(flops=flops,
                           transcendentals=B * n_cos_p,
                           bytes_accessed=bytes_accessed)

    return pl.pallas_call(
        kernel,
        out_shape=jax.ShapeDtypeStruct((B, out_w), jnp.float32),
        grid_spec=pltpu.PrefetchScalarGridSpec(
            num_scalar_prefetch=0,
            grid=(B // tb,),
            in_specs=[
                pl.BlockSpec((tb, D_in), lambda i: (i, 0)),      # x tile
                pl.BlockSpec((tb, 1), lambda i: (i, 0)),         # tau tile
                pl.BlockSpec((1, n_cos_p), lambda i: (0, 0)),    # pi*i (resident)
                pl.BlockSpec((D_in, H), lambda i: (0, 0)),       # W_f (resident)
                pl.BlockSpec((1, H), lambda i: (0, 0)),          # b_f
                pl.BlockSpec((n_cos_p, H), lambda i: (0, 0)),    # W_e (resident)
                pl.BlockSpec((1, H), lambda i: (0, 0)),          # b_e
            ],
            out_specs=pl.BlockSpec((tb, out_w), lambda i: (i, 0)),
        ),
        compiler_params=pltpu.CompilerParams(
            dimension_semantics=("parallel",)),
        cost_estimate=cost,
    )(x, tau, freq, w_f, b_f, w_e, b_e)


def iqn_feature_ref(x, tau, w_f, b_f, w_e, b_e, *, reduction='product'):
    """Pure-JAX reference mirroring the PyTorch forward semantics."""
    feat = jnp.maximum(x @ w_f + b_f, 0.0)
    n_cos = w_e.shape[0]
    i = jnp.arange(1, n_cos + 1, dtype=jnp.float32)[None, :]
    cos_feat = jnp.cos(math.pi * i * tau)
    emb = jnp.maximum(cos_feat @ w_e + b_e, 0.0)
    if reduction == 'residual':
        return feat * (1.0 + emb)
    if reduction == 'concat':
        return jnp.concatenate([feat, emb], axis=-1)
    return feat * emb


if __name__ == "__main__":
    D_in, n_cos, H = 32, 64, 128

    key = jax.random.PRNGKey(0)
    kx, ktau, k1, k2, k3, k4 = jax.random.split(key, 6)

    # Deterministic, synthetic parameters (Kaiming-ish scaling).
    w_f = jax.random.normal(k1, (D_in, H), dtype=jnp.float32) / math.sqrt(D_in)
    b_f = jax.random.normal(k2, (1, H), dtype=jnp.float32) * 0.01
    w_e = jax.random.normal(k3, (n_cos, H), dtype=jnp.float32) / math.sqrt(n_cos)
    b_e = jax.random.normal(k4, (1, H), dtype=jnp.float32) * 0.01

    ok = True

    # Small batch: all three reductions.
    B = 16
    x = jax.random.normal(kx, (B, D_in), dtype=jnp.float32)
    tau = jax.random.uniform(ktau, (B, 1), dtype=jnp.float32)
    for reduction in ('product', 'residual', 'concat'):
        out = iqn_feature(x, tau, w_f, b_f, w_e, b_e, reduction=reduction)
        out = jax.block_until_ready(out)
        ref = iqn_feature_ref(x, tau, w_f, b_f, w_e, b_e, reduction=reduction)
        ok = ok and bool(jnp.allclose(out, ref, atol=1e-4, rtol=1e-4))

    # Larger batch: exercises the tiled (multi-step) grid path.
    B2 = 256
    x2 = jax.random.normal(kx, (B2, D_in), dtype=jnp.float32)
    tau2 = jax.random.uniform(ktau, (B2, 1), dtype=jnp.float32)
    out2 = jax.block_until_ready(
        iqn_feature(x2, tau2, w_f, b_f, w_e, b_e, reduction='product'))
    ref2 = iqn_feature_ref(x2, tau2, w_f, b_f, w_e, b_e, reduction='product')
    ok = ok and bool(jnp.allclose(out2, ref2, atol=1e-4, rtol=1e-4))

    if ok:
        print("KERNEL_OK")
    else:
        print("KERNEL_MISMATCH")
</pallas_src>

<mosaic_0001>
module attributes {stable_mosaic.version = 11 : i64} {
  func.func @_iqn_feature_kernel(%arg0: i32, %arg1: memref<16x32xf32, #tpu.memory_space<vmem>>, %arg2: memref<16x1xf32, #tpu.memory_space<vmem>>, %arg3: memref<1x128xf32, #tpu.memory_space<vmem>>, %arg4: memref<32x128xf32, #tpu.memory_space<vmem>>, %arg5: memref<1x128xf32, #tpu.memory_space<vmem>>, %arg6: memref<128x128xf32, #tpu.memory_space<vmem>>, %arg7: memref<1x128xf32, #tpu.memory_space<vmem>>, %arg8: memref<16x128xf32, #tpu.memory_space<vmem>>) attributes {dimension_semantics = [#tpu.dimension_semantics<parallel>], iteration_bounds = array<i64: 1>, scalar_prefetch = 0 : i64, scratch_operands = 0 : i64, tpu.core_type = #tpu.core_type<tc>, window_params = [{transform_indices = @transform_0, window_bounds = array<i64: 16, 32>}, {transform_indices = @transform_1, window_bounds = array<i64: 16, 1>}, {pipeline_mode = #tpu.pipeline_mode<synchronous>, transform_indices = @transform_2, window_bounds = array<i64: 1, 128>}, {pipeline_mode = #tpu.pipeline_mode<synchronous>, transform_indices = @transform_3, window_bounds = array<i64: 32, 128>}, {pipeline_mode = #tpu.pipeline_mode<synchronous>, transform_indices = @transform_4, window_bounds = array<i64: 1, 128>}, {pipeline_mode = #tpu.pipeline_mode<synchronous>, transform_indices = @transform_5, window_bounds = array<i64: 128, 128>}, {pipeline_mode = #tpu.pipeline_mode<synchronous>, transform_indices = @transform_6, window_bounds = array<i64: 1, 128>}, {transform_indices = @transform_7, window_bounds = array<i64: 16, 128>}]} {
    %c0 = arith.constant 0 : index
    %c0_0 = arith.constant 0 : index
    %0 = vector.load %arg1[%c0, %c0_0] : memref<16x32xf32, #tpu.memory_space<vmem>>, vector<16x32xf32>
    %c0_1 = arith.constant 0 : index
    %c0_2 = arith.constant 0 : index
    %1 = vector.load %arg4[%c0_1, %c0_2] : memref<32x128xf32, #tpu.memory_space<vmem>>, vector<32x128xf32>
    %c0_3 = arith.constant 0 : index
    %c0_4 = arith.constant 0 : index
    %2 = vector.load %arg6[%c0_3, %c0_4] : memref<128x128xf32, #tpu.memory_space<vmem>>, vector<128x128xf32>
    %cst = arith.constant dense<0.000000e+00> : vector<16x128xf32>
    %3 = tpu.matmul %0, %1, %cst {dimension_numbers = #tpu.dot_dimension_numbers<[1], [0], [0], [1], [0, 0, 1, 1], [], []>} : vector<16x32xf32>, vector<32x128xf32>, vector<16x128xf32> -> vector<16x128xf32>
    %c0_5 = arith.constant 0 : index
    %c0_6 = arith.constant 0 : index
    %4 = vector.load %arg5[%c0_5, %c0_6] : memref<1x128xf32, #tpu.memory_space<vmem>>, vector<1x128xf32>
    %5 = vector.broadcast %4 : vector<1x128xf32> to vector<16x128xf32>
    %6 = arith.addf %3, %5 : vector<16x128xf32>
    %cst_7 = arith.constant 0.000000e+00 : f32
    %7 = vector.broadcast %cst_7 : f32 to vector<16x128xf32>
    %8 = arith.maximumf %6, %7 : vector<16x128xf32>
    %c0_8 = arith.constant 0 : index
    %c0_9 = arith.constant 0 : index
    %9 = vector.load %arg2[%c0_8, %c0_9] : memref<16x1xf32, #tpu.memory_space<vmem>>, vector<16x1xf32>
    %c0_10 = arith.constant 0 : index
    %c0_11 = arith.constant 0 : index
    %10 = vector.load %arg3[%c0_10, %c0_11] : memref<1x128xf32, #tpu.memory_space<vmem>>, vector<1x128xf32>
    %11 = vector.broadcast %9 : vector<16x1xf32> to vector<16x128xf32>
    %12 = vector.broadcast %10 : vector<1x128xf32> to vector<16x128xf32>
    %13 = arith.mulf %11, %12 : vector<16x128xf32>
    %14 = math.cos %13 : vector<16x128xf32>
    %cst_12 = arith.constant dense<0.000000e+00> : vector<16x128xf32>
    %15 = tpu.matmul %14, %2, %cst_12 {dimension_numbers = #tpu.dot_dimension_numbers<[1], [0], [0], [1], [0, 0, 1, 1], [], []>} : vector<16x128xf32>, vector<128x128xf32>, vector<16x128xf32> -> vector<16x128xf32>
    %c0_13 = arith.constant 0 : index
    %c0_14 = arith.constant 0 : index
    %16 = vector.load %arg7[%c0_13, %c0_14] : memref<1x128xf32, #tpu.memory_space<vmem>>, vector<1x128xf32>
    %17 = vector.broadcast %16 : vector<1x128xf32> to vector<16x128xf32>
    %18 = arith.addf %15, %17 : vector<16x128xf32>
    %cst_15 = arith.constant 0.000000e+00 : f32
    %19 = vector.broadcast %cst_15 : f32 to vector<16x128xf32>
    %20 = arith.maximumf %18, %19 : vector<16x128xf32>
    %21 = arith.mulf %8, %20 : vector<16x128xf32>
    %c0_16 = arith.constant 0 : index
    %c0_17 = arith.constant 0 : index
    %22 = vector.load %arg8[%c0_16, %c0_17] : memref<16x128xf32, #tpu.memory_space<vmem>>, vector<16x128xf32>
    tpu.vector_store %arg8[%c0_16, %c0_17], %21 {strides = array<i32>} : memref<16x128xf32, #tpu.memory_space<vmem>>, vector<16x128xf32>,
    return
  }
  func.func @transform_0(%arg0: i32) -> (i32, i32) {
    %c0_i32 = arith.constant 0 : i32
    %c0_i32_0 = arith.constant 0 : i32
    return %arg0, %c0_i32 : i32, i32
  }
  func.func @transform_1(%arg0: i32) -> (i32, i32) {
    %c0_i32 = arith.constant 0 : i32
    %c0_i32_0 = arith.constant 0 : i32
    return %arg0, %c0_i32 : i32, i32
  }
  func.func @transform_2(%arg0: i32) -> (i32, i32) {
    %c0_i32 = arith.constant 0 : i32
    %c0_i32_0 = arith.constant 0 : i32
    %c0_i32_1 = arith.constant 0 : i32
    return %c0_i32, %c0_i32_0 : i32, i32
  }
  func.func @transform_3(%arg0: i32) -> (i32, i32) {
    %c0_i32 = arith.constant 0 : i32
    %c0_i32_0 = arith.constant 0 : i32
    %c0_i32_1 = arith.constant 0 : i32
    return %c0_i32, %c0_i32_0 : i32, i32
  }
  func.func @transform_4(%arg0: i32) -> (i32, i32) {
    %c0_i32 = arith.constant 0 : i32
    %c0_i32_0 = arith.constant 0 : i32
    %c0_i32_1 = arith.constant 0 : i32
    return %c0_i32, %c0_i32_0 : i32, i32
  }
  func.func @transform_5(%arg0: i32) -> (i32, i32) {
    %c0_i32 = arith.constant 0 : i32
    %c0_i32_0 = arith.constant 0 : i32
    %c0_i32_1 = arith.constant 0 : i32
    return %c0_i32, %c0_i32_0 : i32, i32
  }
  func.func @transform_6(%arg0: i32) -> (i32, i32) {
    %c0_i32 = arith.constant 0 : i32
    %c0_i32_0 = arith.constant 0 : i32
    %c0_i32_1 = arith.constant 0 : i32
    return %c0_i32, %c0_i32_0 : i32, i32
  }
  func.func @transform_7(%arg0: i32) -> (i32, i32) {
    %c0_i32 = arith.constant 0 : i32
    %c0_i32_0 = arith.constant 0 : i32
    return %arg0, %c0_i32 : i32, i32
  }
}

</mosaic_0001>

<bundles_post_ra>
// kernel: tpu_custom_call.1
= control target key start
LH: loop header
LB: loop body
LE: loop exit
PB: predicated region body
PF: predicated region fallthrough
CT: control target
= control target key end

     0   :  { %12 = vsyncpa [#allocation3], 0  ;;  %s926_s0 = inlined_call_operand.vmem [shape: f32[16,32], index: 0, kind: input, shape index: {}]   ;;  %s927_s1 = inlined_call_operand.vmem [shape: f32[16,1], index: 1, kind: input, shape index: {}]   ;;  %s928_s2 = inlined_call_operand.vmem [shape: f32[1,128], index: 2, kind: input, shape index: {}]   ;;  %s929_s3 = inlined_call_operand.hbm [shape: f32[32,128], index: 3, kind: input, shape index: {}]   ;;  %s930_s4 = inlined_call_operand.vmem [shape: f32[1,128], index: 4, kind: input, shape index: {}]   ;;  %s931_s5 = inlined_call_operand.hbm [shape: f32[128,128], index: 5, kind: input, shape index: {}]   ;;  %s932_s6 = inlined_call_operand.vmem [shape: f32[1,128], index: 6, kind: input, shape index: {}]   ;;  %s933_s7 = inlined_call_operand.hbm [shape: f32[16,128], index: 7, kind: output, shape index: {}]  }
   0x1   :  { %13 = vsyncpa [#allocation6], 0 }
   0x2   :  { %14 = vsyncpa [#allocation4], 0  ;;  %s725_s24 = smov [#allocation2]   ;;  %s653_s28 = scalar_lea.hbm %s929_s3, 512 }
   0x3   :  { %s26_s25 = sshll.u32 %s725_s24, 4  ;;  %p654_p0 = scmp.ne.s32.totalorder %s929_s3, %s653_s28  ;;  %s27_s25 = int_to_ptr.vmem [resolvable:$true] %s26_s25 }
   0x4   :  { %p657_p1 = scmp.lt.u32.totalorder %s653_s28, %s929_s3 }
   0x6   :  { %p659_p2 = pnand %p657_p1, %p654_p0 }
   0x8   :  { %662 = shalt.err (!%p659_p2)
}
   0x9   :  { %s663_s10 = scalar_lea.vmem %s27_s25, 512  ;;  %p668_p4 = scmp.lt.s32.totalorder %s27_s25, %s27_s25 }
   0xa   :  { %p664_p3 = scmp.ne.s32.totalorder %s27_s25, %s663_s10  ;;  %p669_p5 = scmp.lt.s32.totalorder %s663_s10, %s663_s10 }
   0xc   :  { %p670_p6 = por %p669_p5, %p668_p4 }
   0xe   :  { %p671_p7 = pnand %p670_p6, %p664_p3 }
  0x10   :  { %674 = shalt.err (!%p671_p7)
}
  0x11   :  { %s726_s11 = smov 128   ;;  %s727_s12 = smov 8  }
  0x12   :  { %32 = dma.hbm_to_vmem [thread:$0]  %s929_s3, 512, %s27_s25, [#allocation3], %s726_s11, %s726_s11, %s727_s12  }
  0x13   :  { %s728_s15 = smov [#allocation5]   ;;  %s675_s19 = scalar_lea.hbm %s931_s5, 2048 }
  0x14   :  { %s40_s16 = sshll.u32 %s728_s15, 4  ;;  %p676_p8 = scmp.ne.s32.totalorder %s931_s5, %s675_s19  ;;  %s41_s16 = int_to_ptr.vmem [resolvable:$true] %s40_s16 }
  0x15   :  { %p679_p9 = scmp.lt.u32.totalorder %s675_s19, %s931_s5 }
  0x17   :  { %p681_p10 = pnand %p679_p9, %p676_p8 }
  0x19   :  { %684 = shalt.err (!%p681_p10)
}
  0x1a   :  { %s685_s24 = scalar_lea.vmem %s41_s16, 2048  ;;  %p690_p12 = scmp.lt.s32.totalorder %s41_s16, %s41_s16 }
  0x1b   :  { %p686_p11 = scmp.ne.s32.totalorder %s41_s16, %s685_s24  ;;  %p691_p13 = scmp.lt.s32.totalorder %s685_s24, %s685_s24 }
  0x1d   :  { %p692_p0 = por %p691_p13, %p690_p12 }
  0x1f   :  { %p693_p1 = pnand %p692_p0, %p686_p11 }
  0x21   :  { %696 = shalt.err (!%p693_p1)
}
  0x22   :  { %46 = dma.hbm_to_vmem [thread:$0]  %s931_s5, 2048, %s41_s16, [#allocation6], %s726_s11, %s726_s11, %s727_s12  }
  0x23   :  { %719 = dma.done.wait [#allocation3], 512  }
  0x24   :  { %720 = vsyncadd [#allocation3], 4294966784 }
  0x25   :  { %721 = dma.done.wait [#allocation6], 2048  }
  0x26   :  { %722 = vsyncadd [#allocation6], 4294965248  ;;  %v729_v0 = vmov 0   ;;  %v168_v1 = vld [vmem:[%s927_s1] sm:$0xff]  ;;  %v169_v2 = vld [vmem:[%s927_s1 + $0x8] sm:$0xff]  ;;  %vm84_vm0 = vcmask 261120  }
  0x27   :  { %644 = vset.pattern.permute.xlu0 %v729_v0  ;;  %v61_v3 = vld [vmem:[#allocation5] sm:$0xff]  ;;  %v62_v4 = vld [vmem:[#allocation5 + $0x8] sm:$0xff]  ;;  %v63_v5 = vld [vmem:[#allocation5 + $0x10] sm:$0xff]  ;;  %v730_v58 = vmov 683565275   ;;  %s736_s15 = smov [#allocation7]  }
  0x28   :  { %173 = vperm.xlu0 %644, %v168_v1   ;;  %v592_v6 = vpack.c.bf16 %v62_v4, %v61_v3  ;;  %v64_v7 = vld [vmem:[#allocation5 + $0x18] sm:$0xff]  ;;  %v65_v9 = vld [vmem:[#allocation5 + $0x20] sm:$0xff]  ;;  %v66_v10 = vld [vmem:[#allocation5 + $0x28] sm:$0xff]  ;;  %v731_v61 = vmov 2475754826   ;;  %s488_s16 = sshll.u32 %s736_s15, 4  ;;  %s489_s16 = int_to_ptr.vmem [resolvable:$true] %s488_s16 }
  0x29   :  { %v596_v8 = vpack.c.bf16 %v64_v7, %v63_v5  ;;  %v57_v11 = vld [vmem:[#allocation2] sm:$0xff]  ;;  %v58_v12 = vld [vmem:[#allocation2 + $0x8] sm:$0xff]  ;;  %v600_v13 = vpack.c.bf16 %v66_v10, %v65_v9  ;;  %v59_v15 = vld [vmem:[#allocation2 + $0x10] sm:$0xff]  ;;  %v732_v63 = vmov 2131351028   ;;  %p702_p3 = scmp.lt.s32.totalorder %s489_s16, %s489_s16 }
  0x2a   :  { %593 = vmatprep.subr.bf16.mxu1 %v592_v6  ;;  %v584_v14 = vpack.c.bf16 %v58_v12, %v57_v11  ;;  %v60_v16 = vld [vmem:[#allocation2 + $0x18] sm:$0xff]  ;;  %v67_v17 = vld [vmem:[#allocation5 + $0x30] sm:$0xff]  ;;  %v69_v21 = vld [vmem:[#allocation5 + $0x40] sm:$0xff]  ;;  %v733_v1 = vmov 2102212464  }
  0x2b   :  { %595 = vmatpush3.bf16.msra.mxu1 %v592_v6  ;;  %v68_v18 = vld [vmem:[#allocation5 + $0x38] sm:$0xff]  ;;  %v588_v19 = vpack.c.bf16 %v60_v16, %v59_v15  ;;  %v70_v22 = vld [vmem:[#allocation5 + $0x48] sm:$0xff]  ;;  %v71_v24 = vld [vmem:[#allocation5 + $0x50] sm:$0xff]  ;;  %v734_v6 = vmov 920167782  }
  0x2c   :  { %178 = vperm.xlu0 %644, %v169_v2   ;;  %597 = vmatprep.subr.bf16.mxu1 %v596_v8  ;;  %v604_v20 = vpack.c.bf16 %v68_v18, %v67_v17  ;;  %v608_v23 = vpack.c.bf16 %v70_v22, %v69_v21  ;;  %v72_v25 = vld [vmem:[#allocation5 + $0x58] sm:$0xff]  ;;  %v73_v27 = vld [vmem:[#allocation5 + $0x60] sm:$0xff]  ;;  %v74_v28 = vld [vmem:[#allocation5 + $0x68] sm:$0xff]  ;;  %v735_v11 = vmov 1326507024  }
  0x2d   :  { %585 = vmatprep.subr.bf16.mxu0 %v584_v14  ;;  %v612_v26 = vpack.c.bf16 %v72_v25, %v71_v24  ;;  %v616_v29 = vpack.c.bf16 %v74_v28, %v73_v27  ;;  %v75_v30 = vld [vmem:[#allocation5 + $0x70] sm:$0xff]  ;;  %v76_v31 = vld [vmem:[#allocation5 + $0x78] sm:$0xff]  ;;  %v55_v33 = vld [vmem:[%s926_s0] sm:$0xff] }
  0x2e   :  { %587 = vmatpush3.bf16.msra.mxu0 %v584_v14  ;;  %v620_v32 = vpack.c.bf16 %v76_v31, %v75_v30  ;;  %v56_v34 = vld [vmem:[%s926_s0 + $0x8] sm:$0xff]  ;;  %546 = vmatprep.mubr.msk.f32.mxu0 %vm84_vm0, %v55_v33  ;;  %v504_v35 = vld [vmem:[%s928_s2] ss:$0 sm:$0xff] }
  0x2f   :  { %599 = vmatpush3.bf16.msra.mxu1 %v596_v8  ;;  %589 = vmatprep.subr.bf16.mxu0 %v588_v19 }
  0x30   :  { %601 = vmatprep.subr.bf16.mxu1 %v600_v13 }
  0x32   :  { %591 = vmatpush3.bf16.msra.mxu0 %v588_v19 }
  0x33   :  { %603 = vmatpush3.bf16.msra.mxu1 %v600_v13 }
  0x34   :  { %605 = vmatprep.subr.bf16.mxu1 %v604_v20 }
  0x35   :  { %547 = vmatmul.mubr.msk.f32.vlgmr.msra.gmra.mrb[0].mxu0 %vm84_vm0, %v56_v34 }
  0x37   :  { %607 = vmatpush3.bf16.msra.mxu1 %v604_v20 }
  0x38   :  { %609 = vmatprep.subr.bf16.mxu1 %v608_v23 }
  0x3b   :  { %611 = vmatpush3.bf16.msra.mxu1 %v608_v23 }
  0x3c   :  { %613 = vmatprep.subr.bf16.mxu1 %v612_v26 }
  0x3f   :  { %615 = vmatpush3.bf16.msra.mxu1 %v612_v26 }
  0x40   :  { %617 = vmatprep.subr.bf16.mxu1 %v616_v29 }
  0x43   :  { %619 = vmatpush3.bf16.msra.mxu1 %v616_v29 }
  0x44   :  { %621 = vmatprep.subr.bf16.mxu1 %v620_v32 }
  0x47   :  { %623 = vmatpush3.bf16.msra.mxu1 %v620_v32 }
  0xa7   :  { %v174_v36 = vpop.permute.xlu0 %173 }
  0xa8   :  { %v822_v37 = vmul.f32 %v504_v35, %v174_v36 }
  0xaa   :  { %v192_v38 = vand.u32 2139095040, %v822_v37  ;;  %v189_v42 = vand.u32 2147483647, %v822_v37  ;;  %vm191_vm15 = vcmp.lt.s32.totalorder %v822_v37, 0 }
  0xab   :  { %v179_v39 = vpop.permute.xlu0 %178 }
  0xac   :  { %v193_v40 = vshrl.u32 %v192_v38, 23  ;;  %v825_v41 = vmul.f32 %v504_v35, %v179_v39  ;;  %v196_v48 = vand.u32 8388607, %v189_v42  ;;  %vm882_vm0 = vcmp.le.f32.partialorder %v189_v42, 0.7853982 }
  0xae   :  { %v505_v43 = vadd.s32 4294967169, %v193_v40  ;;  %v295_v44 = vand.u32 2139095040, %v825_v41  ;;  %v292_v45 = vand.u32 2147483647, %v825_v41  ;;  %v197_v54 = vor.u32 8388608, %v196_v48 }
  0xb0   :  { %v199_v46 = vadd.s32 1, %v505_v43  ;;  %v296_v47 = vshrl.u32 %v295_v44, 23  ;;  %v299_v49 = vand.u32 8388607, %v292_v45  ;;  %v237_v25 = vshll.u32 %v197_v54, 8 }
  0xb2   :  { %vm200_vm1 = vcmp.gt.s32.totalorder %v199_v46, 0  ;;  %v509_v50 = vadd.s32 4294967169, %v296_v47  ;;  %v300_v55 = vor.u32 8388608, %v299_v49 }
  0xb3   :  { %v201_v51 = vsel %vm200_vm1, %v199_v46, 0  ;;  %vm294_vm1 = vcmp.lt.s32.totalorder %v825_v41, 0 }
  0xb4   :  { %v203_v52 = vand.u32 31, %v201_v51  ;;  %v302_v53 = vadd.s32 1, %v509_v50  ;;  %v202_v56 = vshrl.u32 %v201_v51, 5  ;;  %v340_v35 = vshll.u32 %v300_v55, 8 }
  0xb6   :  { %v204_v57 = vsub.s32 32, %v203_v52  ;;  %vm303_vm2 = vcmp.gt.s32.totalorder %v302_v53, 0  ;;  %v206_v59 = vshll.u32 %v730_v58, %v203_v52  ;;  %v209_v62 = vshll.u32 %v731_v61, %v203_v52 }
  0xb7   :  { %v304_v60 = vsel %vm303_vm2, %v302_v53, 0  ;;  %v212_v0 = vshll.u32 %v732_v63, %v203_v52  ;;  %v215_v2 = vshll.u32 %v733_v1, %v203_v52  ;;  %v218_v7 = vshll.u32 %v734_v6, %v203_v52 }
  0xb8   :  { %v835_v3 = vshrl.u32 %v304_v60, 5  ;;  %v306_v4 = vand.u32 31, %v304_v60  ;;  %v207_v5 = vshrl.u32 %v731_v61, %v204_v57  ;;  %v210_v8 = vshrl.u32 %v732_v63, %v204_v57 }
  0xb9   :  { %v213_v9 = vshrl.u32 %v733_v1, %v204_v57  ;;  %v216_v10 = vshrl.u32 %v734_v6, %v204_v57  ;;  %v219_v12 = vshrl.u32 %v735_v11, %v204_v57  ;;  %v205_v16 = vshrl.u32 %v730_v58, %v204_v57 }
  0xba   :  { %v307_v13 = vsub.s32 32, %v306_v4  ;;  %v318_v14 = vshll.u32 %v733_v1, %v306_v4  ;;  %v321_v15 = vshll.u32 %v734_v6, %v306_v4  ;;  %v208_v17 = vor.u32 %v207_v5, %v206_v59 }
  0xbb   :  { %v211_v18 = vor.u32 %v210_v8, %v209_v62  ;;  %v214_v19 = vor.u32 %v213_v9, %v212_v0  ;;  %v217_v20 = vor.u32 %v216_v10, %v215_v2  ;;  %v220_v23 = vor.u32 %v219_v12, %v218_v7 }
  0xbc   :  { %v319_v21 = vshrl.u32 %v734_v6, %v307_v13  ;;  %v322_v22 = vshrl.u32 %v735_v11, %v307_v13  ;;  %vm221_vm3 = vcmp.lt.s32.totalorder %v202_v56, 1  ;;  %vm223_vm4 = vcmp.lt.s32.totalorder %v202_v56, 3 }
  0xbd   :  { %vm224_vm5 = vcmp.lt.s32.totalorder %v202_v56, 4  ;;  %v225_v24 = vsel %vm221_vm3, %v205_v16, %v208_v17  ;;  %v229_v29 = vsel %vm221_vm3, %v208_v17, %v211_v18  ;;  %v233_v32 = vsel %vm221_vm3, %v211_v18, %v214_v19 }
  0xbe   :  { %v320_v26 = vor.u32 %v319_v21, %v318_v14  ;;  %v323_v27 = vor.u32 %v322_v22, %v321_v15  ;;  %v226_v28 = vsel %vm224_vm5, %v214_v19, 2102212464  ;;  %v230_v31 = vsel %vm224_vm5, %v217_v20, 920167782 }
  0xbf   :  { %v227_v30 = vsel %vm223_vm4, %v211_v18, %v226_v28  ;;  %v234_v33 = vsel %vm224_vm5, %v220_v23, 1326507024  ;;  %vm327_vm6 = vcmp.lt.s32.totalorder %v835_v3, 4  ;;  %vm222_vm7 = vcmp.lt.s32.totalorder %v202_v56, 2 }
  0xc0   :  { %v231_v34 = vsel %vm223_vm4, %v214_v19, %v230_v31  ;;  %v333_v36 = vsel %vm327_vm6, %v320_v26, 920167782  ;;  %v337_v38 = vsel %vm327_vm6, %v323_v27, 1326507024  ;;  %v235_v40 = vsel %vm223_vm4, %v217_v20, %v234_v33 }
  0xc1   :  { %v232_v39 = vsel %vm222_vm7, %v229_v29, %v231_v34  ;;  %v228_v43 = vsel %vm222_vm7, %v225_v24, %v227_v30  ;;  %v236_v44 = vsel %vm222_vm7, %v233_v32, %v235_v40  ;;  %v309_v50 = vshll.u32 %v730_v58, %v306_v4 }
  0xc2   :  { %v846_v46 = vmul.u32.u64.low %v237_v25, %v232_v39  ;;  %v847_v47 = vmul.u32.u64.high %v237_v25, %v232_v39, %v846_v46  ;;  %v849_v48 = vmul.u32.u64.low %v237_v25, %v236_v44  ;;  %v850_v49 = vmul.u32.u64.high %v237_v25, %v236_v44, %v849_v48 }
  0xc3   :  { %v310_v51 = vshrl.u32 %v731_v61, %v307_v13  ;;  %v312_v52 = vshll.u32 %v731_v61, %v306_v4  ;;  %v313_v53 = vshrl.u32 %v732_v63, %v307_v13  ;;  %v315_v54 = vshll.u32 %v732_v63, %v306_v4 }
  0xc4   :  { %v316_v55 = vshrl.u32 %v733_v1, %v307_v13  ;;  %v244_v57 = vmul.u32 %v237_v25, %v228_v43  ;;  %v308_v59 = vshrl.u32 %v730_v58, %v307_v13  ;;  %vm324_vm8 = vcmp.lt.s32.totalorder %v835_v3, 1 }
  0xc5   :  { %v311_v56 = vor.u32 %v310_v51, %v309_v50  ;;  %v247_v60 = vadd.s32 1, %v847_v47  ;;  %v314_v62 = vor.u32 %v313_v53, %v312_v52  ;;  %vm326_vm9 = vcmp.lt.s32.totalorder %v835_v3, 3 }
  0xc6   :  { %v317_v0 = vor.u32 %v316_v55, %v315_v54  ;;  %vm246_vm10 = vc.u32 %v850_v49, %v846_v46  ;;  %vm325_vm11 = vcmp.lt.s32.totalorder %v835_v3, 2  ;;  %v338_v63 = vsel %vm326_vm9, %v320_v26, %v337_v38 }
  0xc7   :  { %v328_v61 = vsel %vm324_vm8, %v308_v59, %v311_v56  ;;  %v248_v1 = vsel %vm246_vm10, %v247_v60, %v847_v47  ;;  %v332_v2 = vsel %vm324_vm8, %v311_v56, %v314_v62  ;;  %v245_v32 = vadd.s32 %v846_v46, %v850_v49 }
  0xc8   :  { %v329_v58 = vsel %vm327_vm6, %v317_v0, 2102212464  ;;  %v334_v4 = vsel %vm326_vm9, %v317_v0, %v333_v36  ;;  %v249_v5 = vadd.s32 %v248_v1, %v244_v57  ;;  %v336_v8 = vsel %vm324_vm8, %v314_v62, %v317_v0 }
  0xc9   :  { %v330_v6 = vsel %vm326_vm9, %v314_v62, %v329_v58  ;;  %v335_v7 = vsel %vm325_vm11, %v332_v2, %v334_v4  ;;  %v339_v9 = vsel %vm325_vm11, %v336_v8, %v338_v63  ;;  %vm894_vm2 = vcmp.le.f32.partialorder %v292_v45, 0.7853982 }
  0xca   :  { %v868_v10 = vmul.u32.u64.low %v340_v35, %v335_v7  ;;  %v869_v11 = vmul.u32.u64.high %v340_v35, %v335_v7, %v868_v10  ;;  %v250_v12 = vadd.s32 536870912, %v249_v5  ;;  %v331_v15 = vsel %vm325_vm11, %v328_v61, %v330_v6 }
  0xcb   :  { %v871_v13 = vmul.u32.u64.low %v340_v35, %v339_v9  ;;  %v872_v14 = vmul.u32.u64.high %v340_v35, %v339_v9, %v871_v13  ;;  %v347_v19 = vmul.u32 %v340_v35, %v331_v15  ;;  %vm281_vm6 = vweird.f32 %v822_v37 }
  0xcc   :  { %v251_v16 = vshrl.u32 %v250_v12, 30  ;;  %v350_v17 = vadd.s32 1, %v869_v11  ;;  %vm384_vm10 = vweird.f32 %v825_v41 }
  0xcd   :  { %vm349_vm12 = vc.u32 %v872_v14, %v868_v10  ;;  %v348_v53 = vadd.s32 %v868_v10, %v872_v14 }
  0xce   :  { %v252_v18 = vshll.u32 %v251_v16, 30  ;;  %v351_v20 = vsel %vm349_vm12, %v350_v17, %v869_v11  ;;  %v275_v63 = vsub.s32 4, %v251_v16 }
  0xcf   :  { %v352_v21 = vadd.s32 %v351_v20, %v347_v19 }
  0xd0   :  { %v253_v3 = vsub.s32 %v249_v5, %v252_v18  ;;  %v276_v5 = vsel %vm191_vm15, %v275_v63, %v251_v16 }
  0xd1   :  { %v353_v23 = vadd.s32 536870912, %v352_v21  ;;  %v278_v7 = vsel %vm882_vm0, 0, %v276_v5 }
  0xd2   :  { %v255_v22 = vsub.s32 0, %v253_v3  ;;  %v282_v11 = vand.u32 3, %v278_v7 }
  0xd3   :  { %v354_v25 = vshrl.u32 %v353_v23, 30 }
  0xd4   :  { %v506_v24 = vmin.u32 %v255_v22, %v253_v3  ;;  %vm287_vm3 = vcmp.eq.s32.totalorder %v282_v11, 2  ;;  %vm284_vm4 = vcmp.eq.s32.totalorder %v282_v11, 0  ;;  %vm283_vm5 = vcmp.lt.s32.totalorder %v282_v11, 2 }
  0xd5   :  { %v355_v27 = vshll.u32 %v354_v25, 30  ;;  %v378_v10 = vsub.s32 4, %v354_v25 }
  0xd6   :  { %v257_v26 = vclz %v506_v24 }
  0xd7   :  { %v356_v29 = vsub.s32 %v352_v21, %v355_v27  ;;  %v379_v16 = vsel %vm294_vm1, %v378_v10, %v354_v25 }
  0xd8   :  { %v507_v28 = vadd.s32 4294967294, %v257_v26  ;;  %v381_v19 = vsel %vm894_vm2, 0, %v379_v16 }
  0xd9   :  { %v358_v31 = vsub.s32 0, %v356_v29  ;;  %v385_v21 = vand.u32 3, %v381_v19 }
  0xda   :  { %vm508_vm13 = vcmp.lt.s32.totalorder %v507_v28, 0 }
  0xdb   :  { %v260_v30 = vsel %vm508_vm13, 0, %v507_v28  ;;  %v510_v35 = vmin.u32 %v358_v31, %v356_v29  ;;  %vm390_vm7 = vcmp.eq.s32.totalorder %v385_v21, 2  ;;  %vm387_vm8 = vcmp.eq.s32.totalorder %v385_v21, 0  ;;  %v501_v31 = vld [vmem:[%s930_s4] ss:$0 sm:$0xff]  ;;  %s697_s4 = scalar_lea.vmem %s489_s16, 256 }
  0xdc   :  { %v261_v33 = vsub.s32 32, %v260_v30  ;;  %v265_v34 = vsub.s32 4294967266, %v260_v30  ;;  %v262_v36 = vshll.u32 %v253_v3, %v260_v30  ;;  %vm386_vm9 = vcmp.lt.s32.totalorder %v385_v21, 2  ;;  %p698_p2 = scmp.ne.s32.totalorder %s489_s16, %s697_s4  ;;  %p703_p4 = scmp.lt.s32.totalorder %s697_s4, %s697_s4 }
  0xdd   :  { %v360_v40 = vclz %v510_v35 }
  0xde   :  { %v263_v38 = vshrl.u32 %v245_v32, %v261_v33  ;;  %v266_v39 = vadd.s32 127, %v265_v34  ;;  %v513_v34 = vld [vmem:[%s932_s6] ss:$0 sm:$0xff]  ;;  %p704_p5 = por %p703_p4, %p702_p3 }
  0xdf   :  { %v511_v47 = vadd.s32 4294967294, %v360_v40 }
  0xe0   :  { %v264_v43 = vor.u32 %v263_v38, %v262_v36  ;;  %v267_v44 = vshll.u32 %v266_v39, 23  ;;  %p705_p6 = pnand %p704_p5, %p698_p2 }
  0xe1   :  { %vm512_vm14 = vcmp.lt.s32.totalorder %v511_v47, 0 }
  0xe2   :  { %v268_v48 = vor.u32 4788187, %v267_v44  ;;  %v271_v51 = vcvt.s32.f32 %v264_v43  ;;  %v363_v52 = vsel %vm512_vm14, 0, %v511_v47 }
  0xe3   :  { %v364_v54 = vsub.s32 32, %v363_v52  ;;  %v368_v55 = vsub.s32 4294967266, %v363_v52  ;;  %v365_v49 = vshll.u32 %v356_v29, %v363_v52 }
  0xe4   :  { %v269_v50 = vand.u32 2147483647, %v268_v48 }
  0xe5   :  { %v366_v57 = vshrl.u32 %v348_v53, %v364_v54  ;;  %v369_v59 = vadd.s32 127, %v368_v55 }
  0xe6   :  { %v272_v46 = vmul.f32 %v271_v51, %v269_v50 }
  0xe7   :  { %v367_v60 = vor.u32 %v366_v57, %v365_v49  ;;  %v370_v62 = vshll.u32 %v369_v59, 23 }
  0xe8   :  { %v273_v56 = vxor.u32 2147483648, %v272_v46 }
  0xe9   :  { %v371_v58 = vor.u32 4788187, %v370_v62  ;;  %v374_v4 = vcvt.s32.f32 %v367_v60 }
  0xea   :  { %v274_v61 = vsel %vm191_vm15, %v273_v56, %v272_v46 }
  0xeb   :  { %v277_v1 = vsel %vm882_vm0, %v822_v37, %v274_v61  ;;  %v372_v2 = vand.u32 2147483647, %v371_v58 }
  0xec   :  { %645 = vcosq.f32 %v277_v1 }
  0xed   :  { %647 = vsinq.f32 %v277_v1  ;;  %v375_v6 = vmul.f32 %v374_v4, %v372_v2 }
  0xef   :  { %v376_v42 = vxor.u32 2147483648, %v375_v6 }
  0xf1   :  { %v377_v9 = vsel %vm294_vm1, %v376_v42, %v375_v6 }
  0xf2   :  { %v380_v12 = vsel %vm894_vm2, %v825_v41, %v377_v9 }
  0xf3   :  { %649 = vcosq.f32 %v380_v12 }
  0xf4   :  { %651 = vsinq.f32 %v380_v12 }
  0xf6   :  { %v646_v13 = vpop.eup %645 }
  0xf7   :  { %v648_v14 = vpop.eup %647  ;;  %v288_v15 = vxor.u32 2147483648, %v646_v13 }
  0xf8   :  { %v285_v17 = vxor.u32 2147483648, %v648_v14 }
  0xf9   :  { %v289_v45 = vsel %vm287_vm3, %v288_v15, %v648_v14 }
  0xfa   :  { %v286_v18 = vsel %vm284_vm4, %v646_v13, %v285_v17 }
  0xfb   :  { %v290_v20 = vsel %vm283_vm5, %v286_v18, %v289_v45 }
  0xfc   :  { %v291_v3 = vsel %vm281_vm6, nan, %v290_v20 }
  0xfd   :  { %581 = vmatprep.mubr.f32.mxu1 %v291_v3  ;;  %v650_v22 = vpop.eup %649 }
  0xfe   :  { %v652_v23 = vpop.eup %651  ;;  %v391_v24 = vxor.u32 2147483648, %v650_v22 }
  0xff   :  { %v388_v26 = vxor.u32 2147483648, %v652_v23 }
 0x100   :  { %v392_v25 = vsel %vm390_vm7, %v391_v24, %v652_v23 }
 0x101   :  { %v389_v27 = vsel %vm387_vm8, %v650_v22, %v388_v26 }
 0x102   :  { %v393_v28 = vsel %vm386_vm9, %v389_v27, %v392_v25 }
 0x103   :  { %v394_v29 = vsel %vm384_vm10, nan, %v393_v28 }
 0x104   :  { %582 = vmatmul.mubr.f32.vlgmr.msra.gmra.mrb[0].mxu1 %v394_v29 }
 0x108   :  { %v548_v30 = vpop.f32.mrb[0].mxu0 }
 0x109   :  { %v157_v37 = vpop.f32.mrb[1].mxu0  ;;  %v163_v32 = vadd.f32 %v548_v30, %v501_v31 }
 0x10a   :  { %v158_v33 = vadd.f32 %v501_v31, %v157_v37 }
 0x10b   :  { %v167_v36 = vmax.f32 %v163_v32, 0.0 }
 0x10c   :  { %v166_v41 = vmax.f32 %v158_v33, 0.0 }
 0x1d7   :  { %v583_v35 = vpop.f32.mrb[0].mxu1 }
 0x1d8   :  { %v474_v38 = vadd.f32 %v583_v35, %v513_v34  ;;  %v468_v39 = vpop.f32.mrb[1].mxu1 }
 0x1d9   :  { %v469_v40 = vadd.f32 %v513_v34, %v468_v39 }
 0x1da   :  { %v478_v43 = vmax.f32 %v474_v38, 0.0 }
 0x1db   :  { %v477_v44 = vmax.f32 %v469_v40, 0.0 }
 0x1dc   :  { %v480_v47 = vmul.f32 %v478_v43, %v167_v36 }
 0x1dd   :  { %v479_v48 = vmul.f32 %v477_v44, %v166_v41 }
 0x1de   :  { %482 = vst [vmem:[#allocation7 + $0x8] sm:$0xff] %v480_v47 }
 0x1df   :  { %481 = vst [vmem:[#allocation7] sm:$0xff] %v479_v48 }
 0x1e0   :  { %708 = shalt.err (!%p705_p6)
}
 0x1e1   :  { %s709_s18 = scalar_lea.hbm %s933_s7, 256 }
 0x1e2   :  { %p710_p7 = scmp.ne.s32.totalorder %s933_s7, %s709_s18  ;;  %p713_p8 = scmp.lt.u32.totalorder %s709_s18, %s933_s7 }
 0x1e4   :  { %p715_p9 = pnand %p713_p8, %p710_p7 }
 0x1e6   :  { %718 = shalt.err (!%p715_p9)
}
 0x1e7   :  { %494 = dma.vmem_to_hbm [thread:$0]  %s489_s16, 256, %s933_s7, [#allocation4], %s726_s11, %s726_s11, %s727_s12  }
 0x1e8   :  { %723 = dma.done.wait [#allocation4], 256  }
 0x1e9   :  { %724 = vsyncadd [#allocation4], 4294967040 }
 0x1ea   :  { %498 = vsyncpa [#allocation3], 1 }
 0x1eb   :  { %499 = vsyncpa [#allocation6], 1 }
 0x1ec   :  { %500 = vsyncpa [#allocation4], 1 }

</bundles_post_ra>
